<compile_context>
chip_gen: v5e
topology: v5e:2x2
jax: 0.10.0
libtpu: 0.0.40
codegen_flags: <defaults>
</compile_context>

<pallas_src>
import jax
import jax.numpy as jnp
from jax.experimental import pallas as pl
from jax.experimental.pallas import tpu as pltpu


def _pos_embed_kernel(x_ref, pos_ref, o_ref):
    # x_ref / o_ref: (tB, S*D) rows of the flattened activation.
    # pos_ref:       (1,  S*D) resident positional-embedding row, broadcast
    #                over the batch rows of this block via jnp broadcasting.
    o_ref[...] = x_ref[...] + pos_ref[...]


def _choose_batch_tile(B: int, row_bytes: int, target_block_bytes: int = 2 << 20) -> int:
    """Pick how many batch rows each grid step processes.

    Targets ~target_block_bytes per streamed block (the measured HBM-bandwidth
    sweet spot for mem-bound adds), aligned to 8 sublanes (f32 granularity)
    unless the whole batch fits in one block.
    """
    tb = max(1, target_block_bytes // max(row_bytes, 1))
    if tb >= B:
        return B
    tb = max(8, (tb // 8) * 8)  # second-to-last block dim must be a multiple of 8
    return min(tb, B)


def positional_embedding_1d(x: jax.Array, pos_embedding: jax.Array) -> jax.Array:
    """Adds a (1, seq_len, dim) positional embedding to a (batch, seq_len, dim) input."""
    B, S, D = x.shape
    assert pos_embedding.shape == (1, S, D), pos_embedding.shape

    dtype = x.dtype
    itemsize = jnp.dtype(dtype).itemsize
    N = S * D                      # lane-dense flattened row length
    row_bytes = N * itemsize

    # Flatten: keeps HBM layout identical (row-major view) but presents a wide
    # last dim to the kernel -> unmasked vector stores, big rectangular DMAs.
    x2 = x.reshape(B, N)
    pos2 = pos_embedding.astype(dtype).reshape(1, N)   # match dtypes wrapper-side

    tb = _choose_batch_tile(B, row_bytes)
    grid = (pl.cdiv(B, tb),)

    # VMEM budget: 2 pipeline buffers each for x and out + (double-buffered)
    # resident pos row, with ~50% headroom.  Floor at the 16 MiB v5e default,
    # cap at 48 MiB so it also fits v7x's 64 MiB per-TC VMEM.
    block_bytes = tb * row_bytes
    vmem_needed = 4 * block_bytes + 2 * row_bytes
    vmem_limit = min(48 << 20, max(16 << 20, int(vmem_needed * 1.5)))

    out2 = pl.pallas_call(
        _pos_embed_kernel,
        out_shape=jax.ShapeDtypeStruct((B, N), dtype),
        grid_spec=pltpu.PrefetchScalarGridSpec(
            num_scalar_prefetch=0,
            grid=grid,
            in_specs=[
                # Streamed activation rows: one big (tB, S*D) block per step.
                pl.BlockSpec((tb, N), lambda i: (i, 0)),
                # Positional embedding: same (only) block every step -> resident.
                pl.BlockSpec((1, N), lambda i: (0, 0)),
            ],
            out_specs=pl.BlockSpec((tb, N), lambda i: (i, 0)),
        ),
        compiler_params=pltpu.CompilerParams(
            dimension_semantics=("parallel",),
            vmem_limit_bytes=vmem_limit,
        ),
    )(x2, pos2)

    return out2.reshape(B, S, D)


if __name__ == "__main__":
    B, S, D = 2, 8, 32

    key = jax.random.PRNGKey(0)
    kx, kp = jax.random.split(key)

    x = jax.random.normal(kx, (B, S, D), dtype=jnp.float32)
    # Parameter init: the PyTorch module initializes pos_embedding to zeros; use
    # a deterministic non-zero value so the broadcast add is actually exercised.
    pos_embedding = jax.random.normal(kp, (1, S, D), dtype=jnp.float32) * 0.02

    out = positional_embedding_1d(x, pos_embedding)
    out = jax.block_until_ready(out)

    # Reference check in plain JAX (broadcast add).
    ref = x + pos_embedding
    assert out.shape == (B, S, D)
    assert jnp.allclose(out, ref, atol=1e-6, rtol=1e-6), "mismatch vs reference"

    print("KERNEL_OK")
</pallas_src>

<mosaic_0001>
module attributes {stable_mosaic.version = 11 : i64} {
  func.func @_pos_embed_kernel(%arg0: i32, %arg1: memref<2x256xf32, #tpu.memory_space<vmem>>, %arg2: memref<1x256xf32, #tpu.memory_space<vmem>>, %arg3: memref<2x256xf32, #tpu.memory_space<vmem>>) attributes {dimension_semantics = [#tpu.dimension_semantics<parallel>], iteration_bounds = array<i64: 1>, scalar_prefetch = 0 : i64, scratch_operands = 0 : i64, tpu.core_type = #tpu.core_type<tc>, window_params = [{transform_indices = @transform_0, window_bounds = array<i64: 2, 256>}, {pipeline_mode = #tpu.pipeline_mode<synchronous>, transform_indices = @transform_1, window_bounds = array<i64: 1, 256>}, {transform_indices = @transform_2, window_bounds = array<i64: 2, 256>}]} {
    %c0 = arith.constant 0 : index
    %c0_0 = arith.constant 0 : index
    %0 = vector.load %arg1[%c0, %c0_0] : memref<2x256xf32, #tpu.memory_space<vmem>>, vector<2x256xf32>
    %c0_1 = arith.constant 0 : index
    %c0_2 = arith.constant 0 : index
    %1 = vector.load %arg2[%c0_1, %c0_2] : memref<1x256xf32, #tpu.memory_space<vmem>>, vector<1x256xf32>
    %2 = vector.broadcast %1 : vector<1x256xf32> to vector<2x256xf32>
    %3 = arith.addf %0, %2 : vector<2x256xf32>
    %c0_3 = arith.constant 0 : index
    %c0_4 = arith.constant 0 : index
    %4 = vector.load %arg3[%c0_3, %c0_4] : memref<2x256xf32, #tpu.memory_space<vmem>>, vector<2x256xf32>
    tpu.vector_store %arg3[%c0_3, %c0_4], %3 {strides = array<i32>} : memref<2x256xf32, #tpu.memory_space<vmem>>, vector<2x256xf32>,
    return
  }
  func.func @transform_0(%arg0: i32) -> (i32, i32) {
    %c0_i32 = arith.constant 0 : i32
    %c0_i32_0 = arith.constant 0 : i32
    return %arg0, %c0_i32 : i32, i32
  }
  func.func @transform_1(%arg0: i32) -> (i32, i32) {
    %c0_i32 = arith.constant 0 : i32
    %c0_i32_0 = arith.constant 0 : i32
    %c0_i32_1 = arith.constant 0 : i32
    return %c0_i32, %c0_i32_0 : i32, i32
  }
  func.func @transform_2(%arg0: i32) -> (i32, i32) {
    %c0_i32 = arith.constant 0 : i32
    %c0_i32_0 = arith.constant 0 : i32
    return %arg0, %c0_i32 : i32, i32
  }
}

</mosaic_0001>

<bundles_post_ra>
// kernel: tpu_custom_call.1
= control target key start
LH: loop header
LB: loop body
LE: loop exit
PB: predicated region body
PF: predicated region fallthrough
CT: control target
= control target key end

     0   :  { %7 = vsyncpa [#allocation3], 0  ;;  %s177_s0 = inlined_call_operand.hbm [shape: f32[2,256], index: 0, kind: input, shape index: {}]   ;;  %s178_s1 = inlined_call_operand.hbm [shape: f32[1,256], index: 1, kind: input, shape index: {}]   ;;  %s179_s2 = inlined_call_operand.hbm [shape: f32[2,256], index: 2, kind: output, shape index: {}]  }
   0x1   :  { %8 = vsyncpa [#allocation6], 0 }
   0x2   :  { %9 = vsyncpa [#allocation4], 0  ;;  %s15_s11 = sshll.u32 %s177_s0, 4  ;;  %s150_s12 = smov [#allocation2]   ;;  %s16_s11 = int_to_ptr.hbm [resolvable:$true] %s15_s11 }
   0x3   :  { %s17_s13 = sshll.u32 %s150_s12, 4  ;;  %s26_s16 = sshll.u32 %s178_s1, 4  ;;  %s18_s13 = int_to_ptr.vmem [resolvable:$true] %s17_s13  ;;  %s27_s16 = int_to_ptr.hbm [resolvable:$true] %s26_s16 }
   0x4   :  { %20 = dma.hbm_to_vmem [thread:$0]  %s16_s11, 64, %s18_s13, [#allocation3]  }
   0x5   :  { %s151_s17 = smov [#allocation5]  }
   0x6   :  { %s28_s18 = sshll.u32 %s151_s17, 4  ;;  %s29_s18 = int_to_ptr.vmem [resolvable:$true] %s28_s18 }
   0x7   :  { %31 = dma.hbm_to_vmem [thread:$0]  %s27_s16, 32, %s29_s18, [#allocation6]  }
   0x8   :  { %144 = dma.done.wait [#allocation3], 64  }
   0x9   :  { %145 = vsyncadd [#allocation3], 4294967232 }
   0xa   :  { %146 = dma.done.wait [#allocation6], 32  }
   0xb   :  { %147 = vsyncadd [#allocation6], 4294967264  ;;  %v41_v0 = vld [vmem:[#allocation5] sm:$0x3]  ;;  %vm46_vm0 = vcmask 1041408   ;;  %s152_s0 = smov [#allocation7]  }
   0xc   :  { %v43_v1 = vperm.slane %v41_v0, 0  ;;  %v44_v2 = vperm.slane %v41_v0, 1  ;;  %v40_v3 = vld [vmem:[#allocation2] sm:$0xf]  ;;  %s56_s19 = sshll.u32 %s152_s0, 4  ;;  %s58_s21 = sshll.u32 %s179_s2, 4  ;;  %s57_s19 = int_to_ptr.vmem [resolvable:$true] %s56_s19  ;;  %s59_s21 = int_to_ptr.hbm [resolvable:$true] %s58_s21 }
   0xe   :  { %v45_v4 = vrot.slane %v44_v2, 6 }
  0x10   :  { %v47_v5 = vsel %vm46_vm0, %v43_v1, %v45_v4 }
  0x11   :  { %v49_v6 = vadd.f32 %v47_v5, %v40_v3 }
  0x13   :  { %50 = vst [vmem:[#allocation7] sm:$0xf] %v49_v6 }
  0x14   :  { %61 = dma.vmem_to_hbm [thread:$0]  %s57_s19, 64, %s59_s21, [#allocation4]  }
  0x15   :  { %148 = dma.done.wait [#allocation4], 64  }
  0x16   :  { %149 = vsyncadd [#allocation4], 4294967232 }
  0x17   :  { %66 = vsyncpa [#allocation3], 1 }
  0x18   :  { %67 = vsyncpa [#allocation6], 1 }
  0x19   :  { %68 = vsyncpa [#allocation4], 1 }

</bundles_post_ra>
